<compile_context>
chip_gen: v6e
topology: v6e:2x2x1
jax: 0.10.0
libtpu: 0.0.40
codegen_flags: <defaults>
</compile_context>

<pallas_src>
import jax
import jax.numpy as jnp
import numpy as np
from jax.experimental import pallas as pl
from jax.experimental.pallas import tpu as pltpu


def _crop_split_gt_kernel(y1_ref, y2_ref, data_ref, out_ref):
    # y1_ref, y2_ref : (1, TWN) int32  -- effective per-(w,n) row bounds
    #                   (x-outside columns carry impossible bounds)
    # data_ref/out_ref: (TH, TWN) tiles of the flattened input/output
    th, twn = data_ref.shape
    h0 = pl.program_id(0) * th                                    # int32 scalar
    hh = jax.lax.broadcasted_iota(jnp.int32, (th, twn), 0) + h0   # global row idx
    inside = (hh >= y1_ref[...]) & (hh <= y2_ref[...])            # (TH, TWN)
    x = data_ref[...]
    out_ref[...] = jnp.where(inside, x, jnp.zeros((), dtype=x.dtype))


def _round_half_away_from_zero(x):
    # CUDA round(): halves go away from zero (jnp.round is half-to-even).
    return jnp.where(x >= 0, jnp.floor(x + 0.5), jnp.ceil(x - 0.5))


def _choose_tiles(H, WN, dtype_bytes, target_bytes=6 << 20):
    """Pick (TH, TWN) so each buffered tile is <= ~target_bytes.

    TWN is the full W*N (lane-dense) unless even an 8-row stripe would blow
    the budget, in which case it is a multiple of 128.  TH is a multiple of 8
    (or the full H), capped so the H-grid has >= 2 parallel steps (megacore).
    """
    if WN <= 128 or 8 * WN * dtype_bytes <= target_bytes:
        twn = WN
    else:
        twn = (target_bytes // (8 * dtype_bytes)) // 128 * 128
        twn = int(min(max(128, twn), WN))

    th = target_bytes // max(1, twn * dtype_bytes)
    th = min(th, max(1, (H + 1) // 2))      # keep >= 2 grid steps over H
    if th >= H:
        th = H
    else:
        th = max(8, (th // 8) * 8)          # sublane (8) alignment
        th = min(th, H)
    return int(th), int(twn)


def crop_split_gt(data, rois, c=2):
    """Pallas implementation of CropSplitGt.forward.

    data: (H, W, N), rois: (N, 4). Returns (H, W, N), same dtype as data.
    """
    del c  # TODO(synk): `c` only matters for CropSplit (prediction path), not the GT path.
    H, W, N = data.shape
    WN = W * N

    # --- wrapper-side precompute (tiny, done once in XLA) -------------------
    r = _round_half_away_from_zero(rois.astype(jnp.float32)).astype(jnp.int32)
    x1, y1, x2, y2 = r[:, 0], r[:, 1], r[:, 2], r[:, 3]       # (N,)

    ww = jnp.arange(W, dtype=jnp.int32)[:, None]              # (W, 1)
    xmask = (ww >= x1[None, :]) & (ww <= x2[None, :])         # (W, N)
    BIG = jnp.int32(1 << 30)
    y1_eff = jnp.where(xmask, y1[None, :], BIG).reshape(1, WN)
    y2_eff = jnp.where(xmask, y2[None, :], -BIG).reshape(1, WN)

    data2d = data.reshape(H, WN)                              # free view

    # --- tiling / VMEM budget ----------------------------------------------
    dtype_bytes = jnp.dtype(data.dtype).itemsize
    TH, TWN = _choose_tiles(H, WN, dtype_bytes)
    grid = (pl.cdiv(H, TH), pl.cdiv(WN, TWN))

    tile_bytes = TH * TWN * dtype_bytes
    aux_bytes = 2 * 2 * TWN * 4          # two int32 bound rows, double-buffered
    # 2x double-buffered in + 2x double-buffered out + aux + slack.
    vmem_limit = int(min(48 << 20,
                         max(32 << 20, 4 * tile_bytes + aux_bytes + (4 << 20))))

    out2d = pl.pallas_call(
        _crop_split_gt_kernel,
        out_shape=jax.ShapeDtypeStruct((H, WN), data.dtype),
        grid=grid,
        in_specs=[
            pl.BlockSpec((1, TWN), lambda i, j: (0, j)),      # y1_eff
            pl.BlockSpec((1, TWN), lambda i, j: (0, j)),      # y2_eff
            pl.BlockSpec((TH, TWN), lambda i, j: (i, j)),     # data tile
        ],
        out_specs=pl.BlockSpec((TH, TWN), lambda i, j: (i, j)),
        compiler_params=pltpu.CompilerParams(
            dimension_semantics=("parallel", "parallel"),
            vmem_limit_bytes=vmem_limit,
        ),
    )(y1_eff, y2_eff, data2d)

    return out2d.reshape(H, W, N)


class CropSplitGt:
    """Mirror of the PyTorch nn.Module wrapper."""

    def __init__(self, c=2):
        self.c = c

    def __call__(self, data, rois):
        return crop_split_gt(data, rois, self.c)


def _reference(data, rois):
    data = np.asarray(data)
    rois = np.asarray(rois, dtype=np.float32)
    H, W, N = data.shape

    def rnd(x):  # half-away-from-zero, matching CUDA round()
        return np.where(x >= 0, np.floor(x + 0.5), np.ceil(x - 0.5))

    out = np.zeros_like(data)
    hh = np.arange(H, dtype=np.float32)[:, None, None]
    ww = np.arange(W, dtype=np.float32)[None, :, None]
    x1 = rnd(rois[:, 0])[None, None, :]
    y1 = rnd(rois[:, 1])[None, None, :]
    x2 = rnd(rois[:, 2])[None, None, :]
    y2 = rnd(rois[:, 3])[None, None, :]
    inside = (ww >= x1) & (ww <= x2) & (hh >= y1) & (hh <= y2)
    out[inside] = data[inside]
    return out


if __name__ == "__main__":
    key = jax.random.PRNGKey(0)
    # Non-multiple-of-8 H and non-128 W*N: exercises edge tiles / masked writeback.
    H, W, N = 37, 24, 10

    k_data, k_x1, k_y1, k_w, k_h = jax.random.split(key, 5)
    data = jax.random.normal(k_data, (H, W, N), dtype=jnp.float32)

    # deterministic synthetic ROIs (x1, y1, x2, y2) with x1 <= x2, y1 <= y2
    x1 = jax.random.uniform(k_x1, (N,), minval=0.0, maxval=W / 2.0)
    y1 = jax.random.uniform(k_y1, (N,), minval=0.0, maxval=H / 2.0)
    bw = jax.random.uniform(k_w, (N,), minval=2.0, maxval=W / 2.0)
    bh = jax.random.uniform(k_h, (N,), minval=2.0, maxval=H / 2.0)
    x2 = jnp.clip(x1 + bw, 0, W - 1)
    y2 = jnp.clip(y1 + bh, 0, H - 1)
    rois = jnp.stack([x1, y1, x2, y2], axis=1)  # (N, 4)

    module = CropSplitGt(c=2)
    out = jax.block_until_ready(module(data, rois))

    ref = _reference(data, rois)
    np.testing.assert_allclose(np.asarray(out), ref, rtol=0, atol=0)

    print("KERNEL_OK")
</pallas_src>

<mosaic_0001>
module attributes {stable_mosaic.version = 11 : i64} {
  func.func @_crop_split_gt_kernel(%arg0: i32, %arg1: i32, %arg2: memref<1x240xi32, #tpu.memory_space<vmem>>, %arg3: memref<1x240xi32, #tpu.memory_space<vmem>>, %arg4: memref<16x240xf32, #tpu.memory_space<vmem>>, %arg5: memref<16x240xf32, #tpu.memory_space<vmem>>) attributes {dimension_semantics = [#tpu.dimension_semantics<parallel>, #tpu.dimension_semantics<parallel>], iteration_bounds = array<i64: 3, 1>, scalar_prefetch = 0 : i64, scratch_operands = 0 : i64, tpu.core_type = #tpu.core_type<tc>, window_params = [{transform_indices = @transform_0, window_bounds = array<i64: 1, 240>}, {transform_indices = @transform_1, window_bounds = array<i64: 1, 240>}, {transform_indices = @transform_2, window_bounds = array<i64: 16, 240>}, {transform_indices = @transform_3, window_bounds = array<i64: 16, 240>}]} {
    %c16_i32 = arith.constant 16 : i32
    %0 = arith.muli %arg0, %c16_i32 : i32
    %1 = tpu.iota {dimensions = array<i32: 0>} : vector<16x240xi32>
    %2 = vector.broadcast %0 : i32 to vector<16x240xi32>
    %3 = arith.addi %1, %2 : vector<16x240xi32>
    %c0 = arith.constant 0 : index
    %c0_0 = arith.constant 0 : index
    %4 = vector.load %arg2[%c0, %c0_0] : memref<1x240xi32, #tpu.memory_space<vmem>>, vector<1x240xi32>
    %5 = vector.broadcast %4 : vector<1x240xi32> to vector<16x240xi32>
    %6 = arith.cmpi sge, %3, %5 : vector<16x240xi32>
    %c0_1 = arith.constant 0 : index
    %c0_2 = arith.constant 0 : index
    %7 = vector.load %arg3[%c0_1, %c0_2] : memref<1x240xi32, #tpu.memory_space<vmem>>, vector<1x240xi32>
    %8 = vector.broadcast %7 : vector<1x240xi32> to vector<16x240xi32>
    %9 = arith.cmpi sle, %3, %8 : vector<16x240xi32>
    %10 = arith.andi %6, %9 : vector<16x240xi1>
    %c0_3 = arith.constant 0 : index
    %c0_4 = arith.constant 0 : index
    %11 = vector.load %arg4[%c0_3, %c0_4] : memref<16x240xf32, #tpu.memory_space<vmem>>, vector<16x240xf32>
    %cst = arith.constant 0.000000e+00 : f32
    %12 = vector.broadcast %cst : f32 to vector<16x240xf32>
    %13 = arith.select %10, %11, %12 : vector<16x240xi1>, vector<16x240xf32>
    %c0_5 = arith.constant 0 : index
    %c0_6 = arith.constant 0 : index
    %14 = vector.load %arg5[%c0_5, %c0_6] : memref<16x240xf32, #tpu.memory_space<vmem>>, vector<16x240xf32>
    tpu.vector_store %arg5[%c0_5, %c0_6], %13 {strides = array<i32>} : memref<16x240xf32, #tpu.memory_space<vmem>>, vector<16x240xf32>,
    return
  }
  func.func @transform_0(%arg0: i32, %arg1: i32) -> (i32, i32) {
    %c0_i32 = arith.constant 0 : i32
    %c0_i32_0 = arith.constant 0 : i32
    return %c0_i32, %arg1 : i32, i32
  }
  func.func @transform_1(%arg0: i32, %arg1: i32) -> (i32, i32) {
    %c0_i32 = arith.constant 0 : i32
    %c0_i32_0 = arith.constant 0 : i32
    return %c0_i32, %arg1 : i32, i32
  }
  func.func @transform_2(%arg0: i32, %arg1: i32) -> (i32, i32) {
    %c0_i32 = arith.constant 0 : i32
    return %arg0, %arg1 : i32, i32
  }
  func.func @transform_3(%arg0: i32, %arg1: i32) -> (i32, i32) {
    %c0_i32 = arith.constant 0 : i32
    return %arg0, %arg1 : i32, i32
  }
}

</mosaic_0001>

<bundles_post_ra>
// kernel: tpu_custom_call.1
= control target key start
LH: loop header
LB: loop body
LE: loop exit
PB: predicated region body
PF: predicated region fallthrough
CT: control target
= control target key end

     0   :  { %8 = vsyncpa [#allocation3], 0  ;;  %s1006_s0 = inlined_call_operand.hbm [shape: s32[1,240], index: 0, kind: input, shape index: {}]   ;;  %s1007_s1 = inlined_call_operand.hbm [shape: s32[1,240], index: 1, kind: input, shape index: {}]   ;;  %s1008_s2 = inlined_call_operand.hbm [shape: f32[37,240], index: 2, kind: input, shape index: {}]   ;;  %s1009_s3 = inlined_call_operand.hbm [shape: f32[37,240], index: 3, kind: output, shape index: {}]  }
   0x1   :  { %9 = vsyncpa [#allocation6], 0 }
   0x2   :  { %10 = vsyncpa [#allocation4], 0 }
   0x3   :  { %12 = vsyncpa [#allocation4 + $0x1], 0  ;;  %s768_s12 = smov 0   ;;  %s770_s13 = smov 0  }
   0x4   :  { %s772_s14 = smov 0   ;;  %s774_s15 = smov 0  }
   0x5   :  { %s776_s16 = smov 0   ;;  %s778_s17 = smov 0  }
   0x6 LB: > { %s799_s18 = sadd.s32 4294967295, %s738_s17   ;;  %s455_s19 = sadd.s32 4294967294, %s738_s17   ;;  %s738_s17 = sphi %s778_s17, %s18_s17   ;;  %s734_s16 = sphi %s776_s16, %s1032_s16   ;;  %s730_s15 = sphi %s774_s15, %s1031_s15   ;;  %s726_s14 = sphi %s772_s14, %s1030_s14   ;;  %s722_s13 = sphi %s770_s13, %s1029_s13   ;;  %s718_s12 = sphi %s768_s12, %s1028_s12  }
   0x7   : > { %s30_s20 = sadd.s32 1, %s734_s16  ;;  %s91_s21 = sadd.s32 1, %s726_s14 }
   0x8   : > { %p32_p0 = scmp.ge.s32.totalorder %s30_s20, 3  ;;  %p98_p1 = scmp.ne.s32.totalorder %s726_s14, %s722_s13 }
   0x9   : > { %p99_p2 = scmp.eq.s32.totalorder %s738_s17, 0  ;;  %p104_p3 = scmp.ne.s32.totalorder %s722_s13, %s718_s12 }
   0xa   : > { %s1034_s20 = smov (%p32_p0, %s30_s20), 0  ;;  %p1010_p5 = scmp.eq.s32.totalorder %s799_s18, 0 }
   0xb   : > { %p811_p4 = por %p99_p2, %p98_p1  ;;  %s86_s23 = ssub.s32 %s734_s16, %s1034_s20 }
   0xc   : > { %p130_p6 = scmp.eq.s32.totalorder %s799_s18, 2  ;;  %p89_p7 = scmp.eq.s32.totalorder %s86_s23, 0 }
   0xd   : > { %s1013_s22 = scalar_select %p811_p4, 1, 0 }
   0xe   : > { %p821_p8 = por %p1010_p5, %p104_p3  ;;  %p825_p9 = por %p130_p6, %p98_p1 }
   0xf   : > { %p136_p10 = scmp.eq.s32.totalorder %s455_s19, 2  ;;  %p456_p12 = scmp.ge.s32.totalorder %s738_s17, 1 }
  0x10   : > { %s1014_s24 = scalar_select %p821_p8, 1, 0 }
  0x11   : > { %s1015_s25 = scalar_select %p825_p9, 1, 0 }
  0x12   : > { %s830_s26 = scalar_select %p89_p7, %s726_s14, %s91_s21  }
  0x13   : > { %p832_p11 = por %p136_p10, %p104_p3  ;;  %p143_p13 = scmp.lt.s32.totalorder %s738_s17, 4 }
  0x14   : > { %s740_s29 = smov [#allocation2]   ;;  %s741_s4 = smov [#allocation5]  }
  0x15   : > { %s1016_s27 = scalar_select %p832_p11, 1, 0 }
  0x16   : > { %p838_p0 = pnand %p456_p12, %p143_p13  ;;  %s159_s30 = sshll.u32 %s740_s29, 4  ;;  %s160_s30 = int_to_ptr.vmem [resolvable:$true] %s159_s30 }
  0x17   : > { %s173_s5 = sshll.u32 %s741_s4, 4  ;;  %s583_s7 = scalar_lea.vmem %s160_s30, 32  ;;  %s174_s5 = int_to_ptr.vmem [resolvable:$true] %s173_s5 }
  0x18   : > { %s1017_s28 = scalar_select %p838_p0, 1, 0 }
  0x19   : > { %p502_p1 = pneg %p838_p0  ;;  %p584_p6 = scmp.ne.s32.totalorder %s160_s30, %s583_s7 }
  0x1a   : > { %p591_p12 = scmp.lt.s32.totalorder %s160_s30, %s160_s30  ;;  %p592_p13 = scmp.lt.s32.totalorder %s583_s7, %s583_s7 }
  0x1b   : > { %p846_p2 = pnand %p502_p1, %p1010_p5 }
  0x1c   : > { %p593_p11 = por %p592_p13, %p591_p12 }
  0x1d   : > { %p574_p3 = pneg %p846_p2 }
  0x1f   : > { %p586_p7 = pnand %p584_p6, %p574_p3 }
  0x21   : > { %p587_p10 = pneg %p586_p7 }
  0x23   : > { %p594_p9 = pnand %p593_p11, %p587_p10 }
  0x25   : > { %597 = shalt.err (!%p594_p9)
}
  0x26   : > { %505 = dma.hbm_to_vmem [thread:$0]  (!%p846_p2), %s1006_s0, 32, %s160_s30, [#allocation3]  }
  0x27   : > { %s609_s10 = scalar_lea.vmem %s174_s5, 32  ;;  %p617_p6 = scmp.lt.s32.totalorder %s174_s5, %s174_s5 }
  0x28   : > { %p610_p1 = scmp.ne.s32.totalorder %s174_s5, %s609_s10  ;;  %p618_p7 = scmp.lt.s32.totalorder %s609_s10, %s609_s10 }
  0x2a   : > { %p612_p5 = pnand %p610_p1, %p574_p3  ;;  %p619_p0 = por %p618_p7, %p617_p6 }
  0x2c   : > { %p613_p8 = pneg %p612_p5 }
  0x2e   : > { %p620_p4 = pnand %p619_p0, %p613_p8 }
  0x30   : > { %623 = shalt.err (!%p620_p4)
}
  0x31   : > { %508 = dma.hbm_to_vmem [thread:$0]  (!%p846_p2), %s1007_s1, 32, %s174_s5, [#allocation6]  }
  0x32   : > { %p459_p9 = scmp.ge.s32.totalorder %s738_s17, 3 }
  0x33   : > { %p1019_p11 = scmp.ne.s32.totalorder (!%p459_p9), %s1013_s22, 0 }
  0x34   : > { %180 = sbr.rel (%p459_p9) target bundleno = 89 (0x59), region = 24 }
  0x39   : > { %183 = sbr.rel (!%p1019_p11) target bundleno = 89 (0x59), region = 28  ;;  %s184_s21 = sand.u32 (%p1019_p11), 1, %s738_s17  }
  0x3a   : > { %s186_s23 = sand.u32 (%p1019_p11), 1, %s726_s14   ;;  %s461_s30 = sshll.u32 (%p1019_p11), %s734_s16, 1 }
  0x3b   : > { %s460_s29 = sshll.u32 (%p1019_p11), %s186_s23, 5  ;;  %s191_s4 = ssub.s32 (%p1019_p11), 5, %s461_s30 }
  0x3c   : > { %p192_p4 = scmp.lt.s32.totalorder (%p1019_p11), %s191_s4, 2  ;;  %s877_s7 = scalar_lea.sflag (%p1019_p11), [#allocation3], %s184_s21 }
  0x3d   : > { %s188_s8 = scalar_lea.vmem (%p1019_p11), [#allocation7], %s460_s29 }
  0x3e   : > { %s1036_s4 = smov (!%p192_p4, %s191_s4), 2 }
  0x3f   : > { %s874_s6 = sshll.u32 %s1036_s4, 8 }
  0x40   : > { %s197_s5 = ssub.s32 512, %s874_s6 }
  0x41   : > { %198 = vsyncadd %s877_s7, %s197_s5  ;;  %p464_p5 = scmp.ne.s32.totalorder %s874_s6, 0  ;;  %s488_s22 = sshll.u32 %s734_s16, 9 }
  0x42   : > { %s885_s11 = scalar_lea.hbm %s1008_s2, %s488_s22  ;;  %s205_s19 = sshll.u32 %s188_s8, 4  ;;  %s887_s19 = int_to_ptr.vmem [resolvable:$true] %s205_s19 }
  0x43   : > { %s624_s21 = scalar_lea.hbm %s885_s11, %s874_s6  ;;  %s628_s30 = scalar_lea.hbm %s1008_s2, 1280 }
  0x44   : > { %p625_p8 = scmp.ne.s32.totalorder %s885_s11, %s624_s21  ;;  %p630_p3 = scmp.lt.s32.totalorder %s628_s30, %s624_s21 }
  0x46   : > { %p626_p0 = pnand %p625_p8, %p464_p5 }
  0x48   : > { %p627_p2 = pneg %p626_p0 }
  0x4a   : > { %p632_p10 = pnand %p630_p3, %p627_p2 }
  0x4c   : > { %635 = shalt.err (!%p632_p10)
}
  0x4d   : > { %s636_s4 = scalar_lea.vmem %s887_s19, %s874_s6  ;;  %s742_s5 = smov [#allocation7]  }
  0x4e   : > { %p637_p12 = scmp.ne.s32.totalorder %s887_s19, %s636_s4  ;;  %s640_s8 = sshll.u32 %s742_s5, 4  ;;  %s641_s8 = int_to_ptr.vmem [resolvable:$false] %s640_s8 }
  0x4f   : > { %s642_s22 = scalar_lea.vmem %s641_s8, 1024  ;;  %p643_p6 = scmp.lt.s32.totalorder %s887_s19, %s641_s8 }
  0x50   : > { %p638_p13 = pnand %p637_p12, %p464_p5  ;;  %p644_p7 = scmp.lt.s32.totalorder %s642_s22, %s636_s4 }
  0x52   : > { %p639_p1 = pneg %p638_p13  ;;  %p645_p9 = por %p644_p7, %p643_p6 }
  0x54   : > { %p646_p11 = pnand %p645_p9, %p639_p1 }
  0x56   : > { %649 = shalt.err (!%p646_p11)
}
  0x57   : > { %s743_s9 = smov 256   ;;  %s744_s10 = smov 16  }
  0x58   : > { %211 = dma.hbm_to_vmem [thread:$0]  (%p464_p5), %s885_s11, %s874_s6, %s887_s19, %s877_s7, %s743_s9, %s743_s9, %s744_s10  }
  0x59 PF: > { %p1020_p4 = scmp.ne.s32.totalorder %s1017_s28, 0 }
  0x5a   : > { %p1021_p8 = scmp.eq.s32.totalorder (!%p1020_p4), %s799_s18, 0 }
  0x5b   : > { %217 = sbr.rel (%p1020_p4) target bundleno = 148 (0x94), region = 32 }
  0x60   : > { %701 = dma.done.wait (%p1021_p8), [#allocation3], 32   ;;  %p1022_p0 = pmov %p1021_p8 }
  0x62   : > { %703 = vsyncadd (%p1022_p0), [#allocation3], 4294967264  ;;  %p1023_p2 = pmov %p1022_p0 }
  0x63   : > { %p1024_p3 = pmov %p1022_p0 }
  0x64   : > { %705 = dma.done.wait (%p1023_p2), [#allocation6], 32  }
  0x65   : > { %707 = vsyncadd (%p1024_p3), [#allocation6], 4294967264  ;;  %s227_s6 = sand.u32 1, %s799_s18   ;;  %s229_s7 = sand.u32 1, %s722_s13  }
  0x66   : > { %s923_s28 = sshll.u32 %s229_s7, 5  ;;  %s228_s11 = scalar_lea.sflag [#allocation3], %s227_s6 }
  0x67   : > { %s926_s19 = scalar_lea.vmem [#allocation7], %s923_s28  ;;  %p1025_p5 = scmp.ne.s32.totalorder %s1014_s24, 0 }
  0x69   : > { %709 = dma.done.wait (%p1025_p5), %s228_s11, 512  }
  0x6a   : > { %711 = vsyncadd (%p1025_p5), %s228_s11, 4294966784  ;;  %s474_s21 = sshll.u32 %s730_s15, 4  ;;  %v271_v0 = vlaneseq  ;;  %v277_v7 = vld [vmem:[#allocation2] sm:$0x3]  ;;  %v290_v8 = vld [vmem:[#allocation5] sm:$0x3] }
  0x6b   : > { %v274_v2 = vstv %s474_s21  ;;  %v307_v14 = vld [vmem:[%s926_s19] sm:$0xff]  ;;  %vm316_vm0 = vcmask 916480   ;;  %v308_v15 = vld [vmem:[%s926_s19 + $0x8] sm:$0xff]  ;;  %v309_v16 = vld [vmem:[%s926_s19 + $0x10] sm:$0xff]  ;;  %s253_s18 = scalar_lea.vmem [#allocation8], %s923_s28  ;;  %s942_s24 = scalar_lea.sflag [#allocation4], %s229_s7 }
  0x6c   : > { %v272_v1 = vshrl.u32 %v271_v0, 7  ;;  %v310_v18 = vld [vmem:[%s926_s19 + $0x18] sm:$0xff]  ;;  %p1026_p10 = scmp.ne.s32.totalorder %s1015_s25, 0 }
  0x6d   : > { %s476_s23 = sshll.u32 (%p1026_p10), %s730_s15, 1 }
  0x6e   : > { %v280_v3 = vsub.s32 0, %v272_v1  ;;  %v284_v4 = vsub.s32 1, %v272_v1  ;;  %v273_v5 = vadd.s32 8, %v272_v1  ;;  %v275_v6 = vadd.s32 %v274_v2, %v272_v1  ;;  %s330_s29 = ssub.s32 (%p1026_p10), 5, %s476_s23 }
  0x6f   : > { %p331_p12 = scmp.lt.s32.totalorder (%p1026_p10), %s330_s29, 2 }
  0x70   : > { %v276_v9 = vadd.s32 %v274_v2, %v273_v5  ;;  %v281_v10 = vrot.slane %v277_v7, %v280_v3  ;;  %v294_v11 = vrot.slane %v290_v8, %v280_v3  ;;  %v285_v12 = vrot.slane %v277_v7, %v284_v4 }
  0x71   : > { %v298_v13 = vrot.slane %v290_v8, %v284_v4 }
  0x72   : > { %vm286_vm1 = vcmp.ge.s32.totalorder %v275_v6, %v281_v10  ;;  %vm299_vm2 = vcmp.le.s32.totalorder %v275_v6, %v294_v11  ;;  %vm287_vm3 = vcmp.ge.s32.totalorder %v275_v6, %v285_v12  ;;  %vm288_vm6 = vcmp.ge.s32.totalorder %v276_v9, %v281_v10 }
  0x73   : > { %vm300_vm4 = vcmp.le.s32.totalorder %v275_v6, %v298_v13  ;;  %vm303_vm5 = vmand %vm286_vm1, %vm299_vm2  ;;  %vm301_vm7 = vcmp.le.s32.totalorder %v276_v9, %v294_v11  ;;  %vm289_vm8 = vcmp.ge.s32.totalorder %v276_v9, %v285_v12  ;;  %vm302_vm9 = vcmp.le.s32.totalorder %v276_v9, %v298_v13 }
  0x74   : > { %v311_v17 = vsel %vm303_vm5, %v307_v14, 0.0  ;;  %vm304_vm10 = vmand %vm287_vm3, %vm300_vm4  ;;  %327 = sbr.rel (!%p1026_p10) target bundleno = 148 (0x94), region = 48 }
  0x75   : > { %315 = vst [vmem:[%s253_s18] sm:$0xff] %v311_v17  ;;  %v312_v19 = vsel %vm304_vm10, %v308_v15, 0.0  ;;  %vm305_vm11 = vmand %vm288_vm6, %vm301_vm7 }
  0x76   : > { %317 = vst.msk [vmem:[%s253_s18 + $0x8] sm:$0xff] %vm316_vm0, %v312_v19  ;;  %v313_v20 = vsel %vm305_vm11, %v309_v16, 0.0  ;;  %vm306_vm12 = vmand %vm289_vm8, %vm302_vm9 }
  0x77   : > { %318 = vst [vmem:[%s253_s18 + $0x10] sm:$0xff] %v313_v20  ;;  %v314_v21 = vsel %vm306_vm12, %v310_v18, 0.0 }
  0x78   : > { %319 = vst.msk [vmem:[%s253_s18 + $0x18] sm:$0xff] %vm316_vm0, %v314_v21 }
  0x79   : > { %s1038_s29 = smov (!%p331_p12, %s330_s29), 2 }
  0x7a   : > { %s947_s30 = sshll.u32 %s1038_s29, 8 }
  0x7b   : > { %s336_s4 = ssub.s32 512, %s947_s30 }
  0x7c   : > { %337 = vsyncadd %s942_s24, %s336_s4  ;;  %p479_p13 = scmp.ne.s32.totalorder %s947_s30, 0  ;;  %s491_s5 = sshll.u32 %s730_s15, 9 }
  0x7d   : > { %s956_s22 = scalar_lea.hbm %s1009_s3, %s491_s5  ;;  %s344_s9 = sshll.u32 %s253_s18, 4  ;;  %s958_s9 = int_to_ptr.vmem [resolvable:$true] %s344_s9 }
  0x7e   : > { %s650_s10 = scalar_lea.vmem %s958_s9, %s947_s30  ;;  %s745_s6 = smov [#allocation8]  }
  0x7f   : > { %p651_p1 = scmp.ne.s32.totalorder %s958_s9, %s650_s10  ;;  %s654_s7 = sshll.u32 %s745_s6, 4  ;;  %s655_s7 = int_to_ptr.vmem [resolvable:$false] %s654_s7 }
  0x80   : > { %s656_s15 = scalar_lea.vmem %s655_s7, 1024  ;;  %p657_p9 = scmp.lt.s32.totalorder %s958_s9, %s655_s7 }
  0x81   : > { %p652_p6 = pnand %p651_p1, %p479_p13  ;;  %p658_p11 = scmp.lt.s32.totalorder %s656_s15, %s650_s10 }
  0x83   : > { %p653_p7 = pneg %p652_p6  ;;  %p659_p4 = por %p658_p11, %p657_p9 }
  0x85   : > { %p660_p8 = pnand %p659_p4, %p653_p7 }
  0x87   : > { %663 = shalt.err (!%p660_p8)
}
  0x88   : > { %s664_s28 = scalar_lea.hbm %s956_s22, %s947_s30  ;;  %s668_s21 = scalar_lea.hbm %s1009_s3, 1280 }
  0x89   : > { %p665_p0 = scmp.ne.s32.totalorder %s956_s22, %s664_s28  ;;  %p669_p5 = scmp.lt.s32.totalorder %s956_s22, %s1009_s3 }
  0x8a   : > { %p670_p10 = scmp.lt.s32.totalorder %s668_s21, %s664_s28 }
  0x8b   : > { %p666_p2 = pnand %p665_p0, %p479_p13 }
  0x8c   : > { %p671_p12 = por %p670_p10, %p669_p5 }
  0x8d   : > { %p667_p3 = pneg %p666_p2 }
  0x8f   : > { %p672_p1 = pnand %p671_p12, %p667_p3 }
  0x91   : > { %675 = shalt.err (!%p672_p1)
}
  0x92   : > { %s746_s29 = smov 256   ;;  %s747_s4 = smov 16  }
  0x93   : > { %350 = dma.vmem_to_hbm [thread:$0]  (%p479_p13), %s958_s9, %s947_s30, %s956_s22, %s942_s24, %s746_s29, %s746_s29, %s747_s4  }
  0x94 PF: > { %p517_p6 = scmp.ge.s32.totalorder %s738_s17, 2  ;;  %s359_s5 = sand.u32 1, %s718_s12  }
  0x95   : > { %p1027_p7 = scmp.ne.s32.totalorder %s1016_s27, 0  ;;  %s360_s8 = scalar_lea.sflag [#allocation4], %s359_s5 }
  0x97   : > { %p510_p9 = pnand %p517_p6, %p1027_p7 }
  0x99   : > { %p511_p11 = pneg %p510_p9 }
  0x9b   : > { %713 = dma.done.wait (%p511_p11), %s360_s8, 512  }
  0x9c   : > { %715 = vsyncadd (%p511_p11), %s360_s8, 4294966784  ;;  %s18_s17 = sadd.s32 1, %s738_s17   ;;  %s1028_s12 = smov %s722_s13 }
  0x9d   : > { %p15_p4 = scmp.ge.s32.totalorder %s18_s17, 5   ;;  %s1029_s13 = smov %s726_s14 }
  0x9e   : > { %s1030_s14 = smov %s830_s26  ;;  %s1031_s15 = smov %s734_s16 }
  0x9f   : > { %s1032_s16 = smov %s1034_s20  ;;  %17 = sbr.rel (!%p15_p4) target bundleno = 6 (0x6), region = 86 }
  0xa4   :  { %365 = vsyncpa [#allocation3], 1 }
  0xa5   :  { %367 = vsyncpa [#allocation3 + $0x1], 1 }
  0xa6   :  { %368 = vsyncpa [#allocation6], 1 }
  0xa7   :  { %369 = vsyncpa [#allocation4], 1 }
  0xa8   :  { %371 = vsyncpa [#allocation4 + $0x1], 1 }

</bundles_post_ra>
